<compile_context>
chip_gen: v7x
topology: tpu7x:2x2x1
jax: 0.10.0
libtpu: 0.0.40
codegen_flags: <defaults>
</compile_context>

<pallas_src>
import jax
import jax.numpy as jnp
from jax.experimental import pallas as pl
from jax.experimental.pallas import tpu as pltpu


LAYER_SIZES = [12, 50, 30, 15, 10, 5, 1]   # matches the nn.Sequential in the module


def _mlp_kernel(x_ref,
                w1_ref, b1_ref, w2_ref, b2_ref, w3_ref, b3_ref,
                w4_ref, b4_ref, w5_ref, b5_ref, w6_ref, b6_ref,
                o_ref):
    """Fused forward: 5x (Linear + ReLU) + Linear + Sigmoid, batch on lanes.

    x_ref is (12, TB); every layer computes z = W @ h + b with W in PyTorch
    (out, in) layout, accumulating in f32 on the MXU. ReLU on the VPU,
    sigmoid exp/reciprocal on the EUP.
    """
    h = x_ref[...]                                  # (12, TB)

    def linear(h, w_ref, b_ref):
        # f32 accumulate; bias add happens directly on the f32 accumulator.
        return jnp.dot(w_ref[...], h, preferred_element_type=jnp.float32) + b_ref[...]

    h = jnp.maximum(linear(h, w1_ref, b1_ref), 0.0)   # (50, TB)
    h = jnp.maximum(linear(h, w2_ref, b2_ref), 0.0)   # (30, TB)
    h = jnp.maximum(linear(h, w3_ref, b3_ref), 0.0)   # (15, TB)
    h = jnp.maximum(linear(h, w4_ref, b4_ref), 0.0)   # (10, TB)
    h = jnp.maximum(linear(h, w5_ref, b5_ref), 0.0)   # ( 5, TB)
    logits = linear(h, w6_ref, b6_ref)                # ( 1, TB)

    # sigmoid: exp -> EUP, approximate reciprocal -> EUP (keeps the VALU free)
    o_ref[...] = pl.reciprocal(1.0 + jnp.exp(-logits), approx=True).astype(o_ref.dtype)


def german_credit_forward(x, params, *, tb=None):
    """x: (B, 12) float32; params: list of (W (out,in), b (out,1))."""
    batch = x.shape[0]
    if tb is None:
        # lane-dense batch tile: 256 keeps padding low for small batches,
        # 512 halves per-step pipeline overhead once the batch is big enough.
        tb = 256 if batch <= 256 else 512
    n_tiles = pl.cdiv(batch, tb)
    b_pad = n_tiles * tb

    # batch-on-lanes: transpose once in the wrapper, pad batch to a tile multiple.
    xt = x.astype(jnp.float32).T                      # (12, B)
    if b_pad != batch:
        xt = jnp.pad(xt, ((0, 0), (0, b_pad - batch)))

    flat_params = []
    in_specs = [pl.BlockSpec((LAYER_SIZES[0], tb), lambda i: (0, i))]
    for w, b in params:
        flat_params.extend([w, b])
        # Full-array blocks + constant index map -> fetched once, VMEM-resident
        # across all grid iterations.
        in_specs.append(pl.BlockSpec(w.shape, lambda i: (0, 0)))
        in_specs.append(pl.BlockSpec(b.shape, lambda i: (0, 0)))

    out_t = pl.pallas_call(
        _mlp_kernel,
        out_shape=jax.ShapeDtypeStruct((1, b_pad), jnp.float32),
        grid=(n_tiles,),
        in_specs=in_specs,
        out_specs=pl.BlockSpec((1, tb), lambda i: (0, i)),
        compiler_params=pltpu.CompilerParams(
            dimension_semantics=("parallel",),        # megacore: split tiles on v7x
        ),
    )(xt, *flat_params)

    return out_t[:, :batch].T                         # (B, 1), PyTorch convention


def init_params(key):
    """Deterministic init mimicking PyTorch Linear (uniform(-1/sqrt(in), 1/sqrt(in))).

    Weights stored in PyTorch layout (out, in); biases as (out, 1) columns so
    they broadcast across the lane (batch) axis inside the kernel.
    """
    params = []
    for i in range(len(LAYER_SIZES) - 1):
        fan_in, fan_out = LAYER_SIZES[i], LAYER_SIZES[i + 1]
        key, kw, kb = jax.random.split(key, 3)
        bound = 1.0 / jnp.sqrt(jnp.float32(fan_in))
        w = jax.random.uniform(kw, (fan_out, fan_in), jnp.float32, -bound, bound)
        b = jax.random.uniform(kb, (fan_out, 1), jnp.float32, -bound, bound)
        params.append((w, b))
    return params


def reference_forward(x, params):
    """Pure-JAX reference matching the PyTorch module semantics."""
    h = x
    for i, (w, b) in enumerate(params):
        h = h @ w.T + b.T
        if i < len(params) - 1:
            h = jnp.maximum(h, 0.0)
    return jax.nn.sigmoid(h)


if __name__ == "__main__":
    key = jax.random.PRNGKey(0)
    kx, kp = jax.random.split(key)
    params = init_params(kp)

    # batch=8 (single padded tile) and batch=300 (padding within one 512 tile)
    for batch in (8, 300):
        x = jax.random.normal(jax.random.fold_in(kx, batch), (batch, 12),
                              dtype=jnp.float32)
        out = jax.block_until_ready(german_credit_forward(x, params))
        ref = reference_forward(x, params)
        assert out.shape == (batch, 1)
        # tolerance accounts for the EUP approximate reciprocal in the sigmoid
        assert jnp.allclose(out, ref, atol=2e-3, rtol=2e-3), \
            "mismatch vs pure-JAX reference"

    print("KERNEL_OK")
</pallas_src>

<mosaic_0001>
module attributes {stable_mosaic.version = 11 : i64} {
  func.func @_mlp_kernel(%arg0: i32, %arg1: memref<12x256xf32, #tpu.memory_space<vmem>>, %arg2: memref<50x12xf32, #tpu.memory_space<vmem>>, %arg3: memref<50x1xf32, #tpu.memory_space<vmem>>, %arg4: memref<30x50xf32, #tpu.memory_space<vmem>>, %arg5: memref<30x1xf32, #tpu.memory_space<vmem>>, %arg6: memref<15x30xf32, #tpu.memory_space<vmem>>, %arg7: memref<15x1xf32, #tpu.memory_space<vmem>>, %arg8: memref<10x15xf32, #tpu.memory_space<vmem>>, %arg9: memref<10x1xf32, #tpu.memory_space<vmem>>, %arg10: memref<5x10xf32, #tpu.memory_space<vmem>>, %arg11: memref<5x1xf32, #tpu.memory_space<vmem>>, %arg12: memref<1x5xf32, #tpu.memory_space<vmem>>, %arg13: memref<1x1xf32, #tpu.memory_space<vmem>>, %arg14: memref<1x256xf32, #tpu.memory_space<vmem>>) attributes {dimension_semantics = [#tpu.dimension_semantics<parallel>], iteration_bounds = array<i64: 1>, scalar_prefetch = 0 : i64, scratch_operands = 0 : i64, tpu.core_type = #tpu.core_type<tc>, window_params = [{transform_indices = @transform_0, window_bounds = array<i64: 12, 256>}, {pipeline_mode = #tpu.pipeline_mode<synchronous>, transform_indices = @transform_1, window_bounds = array<i64: 50, 12>}, {pipeline_mode = #tpu.pipeline_mode<synchronous>, transform_indices = @transform_2, window_bounds = array<i64: 50, 1>}, {pipeline_mode = #tpu.pipeline_mode<synchronous>, transform_indices = @transform_3, window_bounds = array<i64: 30, 50>}, {pipeline_mode = #tpu.pipeline_mode<synchronous>, transform_indices = @transform_4, window_bounds = array<i64: 30, 1>}, {pipeline_mode = #tpu.pipeline_mode<synchronous>, transform_indices = @transform_5, window_bounds = array<i64: 15, 30>}, {pipeline_mode = #tpu.pipeline_mode<synchronous>, transform_indices = @transform_6, window_bounds = array<i64: 15, 1>}, {pipeline_mode = #tpu.pipeline_mode<synchronous>, transform_indices = @transform_7, window_bounds = array<i64: 10, 15>}, {pipeline_mode = #tpu.pipeline_mode<synchronous>, transform_indices = @transform_8, window_bounds = array<i64: 10, 1>}, {pipeline_mode = #tpu.pipeline_mode<synchronous>, transform_indices = @transform_9, window_bounds = array<i64: 5, 10>}, {pipeline_mode = #tpu.pipeline_mode<synchronous>, transform_indices = @transform_10, window_bounds = array<i64: 5, 1>}, {pipeline_mode = #tpu.pipeline_mode<synchronous>, transform_indices = @transform_11, window_bounds = array<i64: 1, 5>}, {pipeline_mode = #tpu.pipeline_mode<synchronous>, transform_indices = @transform_12, window_bounds = array<i64: 1, 1>}, {transform_indices = @transform_13, window_bounds = array<i64: 1, 256>}]} {
    %c0 = arith.constant 0 : index
    %c0_0 = arith.constant 0 : index
    %0 = vector.load %arg1[%c0, %c0_0] : memref<12x256xf32, #tpu.memory_space<vmem>>, vector<12x256xf32>
    %c0_1 = arith.constant 0 : index
    %c0_2 = arith.constant 0 : index
    %1 = vector.load %arg2[%c0_1, %c0_2] : memref<50x12xf32, #tpu.memory_space<vmem>>, vector<50x12xf32>
    %cst = arith.constant dense<0.000000e+00> : vector<50x256xf32>
    %2 = tpu.matmul %1, %0, %cst {dimension_numbers = #tpu.dot_dimension_numbers<[1], [0], [0], [1], [0, 0, 1, 1], [], []>} : vector<50x12xf32>, vector<12x256xf32>, vector<50x256xf32> -> vector<50x256xf32>
    %c0_3 = arith.constant 0 : index
    %c0_4 = arith.constant 0 : index
    %3 = vector.load %arg3[%c0_3, %c0_4] : memref<50x1xf32, #tpu.memory_space<vmem>>, vector<50x1xf32>
    %4 = vector.broadcast %3 : vector<50x1xf32> to vector<50x256xf32>
    %5 = arith.addf %2, %4 : vector<50x256xf32>
    %cst_5 = arith.constant 0.000000e+00 : f32
    %6 = vector.broadcast %cst_5 : f32 to vector<50x256xf32>
    %7 = arith.maximumf %5, %6 : vector<50x256xf32>
    %c0_6 = arith.constant 0 : index
    %c0_7 = arith.constant 0 : index
    %8 = vector.load %arg4[%c0_6, %c0_7] : memref<30x50xf32, #tpu.memory_space<vmem>>, vector<30x50xf32>
    %cst_8 = arith.constant dense<0.000000e+00> : vector<30x256xf32>
    %9 = tpu.matmul %8, %7, %cst_8 {dimension_numbers = #tpu.dot_dimension_numbers<[1], [0], [0], [1], [0, 0, 1, 1], [], []>} : vector<30x50xf32>, vector<50x256xf32>, vector<30x256xf32> -> vector<30x256xf32>
    %c0_9 = arith.constant 0 : index
    %c0_10 = arith.constant 0 : index
    %10 = vector.load %arg5[%c0_9, %c0_10] : memref<30x1xf32, #tpu.memory_space<vmem>>, vector<30x1xf32>
    %11 = vector.broadcast %10 : vector<30x1xf32> to vector<30x256xf32>
    %12 = arith.addf %9, %11 : vector<30x256xf32>
    %cst_11 = arith.constant 0.000000e+00 : f32
    %13 = vector.broadcast %cst_11 : f32 to vector<30x256xf32>
    %14 = arith.maximumf %12, %13 : vector<30x256xf32>
    %c0_12 = arith.constant 0 : index
    %c0_13 = arith.constant 0 : index
    %15 = vector.load %arg6[%c0_12, %c0_13] : memref<15x30xf32, #tpu.memory_space<vmem>>, vector<15x30xf32>
    %cst_14 = arith.constant dense<0.000000e+00> : vector<15x256xf32>
    %16 = tpu.matmul %15, %14, %cst_14 {dimension_numbers = #tpu.dot_dimension_numbers<[1], [0], [0], [1], [0, 0, 1, 1], [], []>} : vector<15x30xf32>, vector<30x256xf32>, vector<15x256xf32> -> vector<15x256xf32>
    %c0_15 = arith.constant 0 : index
    %c0_16 = arith.constant 0 : index
    %17 = vector.load %arg7[%c0_15, %c0_16] : memref<15x1xf32, #tpu.memory_space<vmem>>, vector<15x1xf32>
    %18 = vector.broadcast %17 : vector<15x1xf32> to vector<15x256xf32>
    %19 = arith.addf %16, %18 : vector<15x256xf32>
    %cst_17 = arith.constant 0.000000e+00 : f32
    %20 = vector.broadcast %cst_17 : f32 to vector<15x256xf32>
    %21 = arith.maximumf %19, %20 : vector<15x256xf32>
    %c0_18 = arith.constant 0 : index
    %c0_19 = arith.constant 0 : index
    %22 = vector.load %arg8[%c0_18, %c0_19] : memref<10x15xf32, #tpu.memory_space<vmem>>, vector<10x15xf32>
    %cst_20 = arith.constant dense<0.000000e+00> : vector<10x256xf32>
    %23 = tpu.matmul %22, %21, %cst_20 {dimension_numbers = #tpu.dot_dimension_numbers<[1], [0], [0], [1], [0, 0, 1, 1], [], []>} : vector<10x15xf32>, vector<15x256xf32>, vector<10x256xf32> -> vector<10x256xf32>
    %c0_21 = arith.constant 0 : index
    %c0_22 = arith.constant 0 : index
    %24 = vector.load %arg9[%c0_21, %c0_22] : memref<10x1xf32, #tpu.memory_space<vmem>>, vector<10x1xf32>
    %25 = vector.broadcast %24 : vector<10x1xf32> to vector<10x256xf32>
    %26 = arith.addf %23, %25 : vector<10x256xf32>
    %cst_23 = arith.constant 0.000000e+00 : f32
    %27 = vector.broadcast %cst_23 : f32 to vector<10x256xf32>
    %28 = arith.maximumf %26, %27 : vector<10x256xf32>
    %c0_24 = arith.constant 0 : index
    %c0_25 = arith.constant 0 : index
    %29 = vector.load %arg10[%c0_24, %c0_25] : memref<5x10xf32, #tpu.memory_space<vmem>>, vector<5x10xf32>
    %cst_26 = arith.constant dense<0.000000e+00> : vector<5x256xf32>
    %30 = tpu.matmul %29, %28, %cst_26 {dimension_numbers = #tpu.dot_dimension_numbers<[1], [0], [0], [1], [0, 0, 1, 1], [], []>} : vector<5x10xf32>, vector<10x256xf32>, vector<5x256xf32> -> vector<5x256xf32>
    %c0_27 = arith.constant 0 : index
    %c0_28 = arith.constant 0 : index
    %31 = vector.load %arg11[%c0_27, %c0_28] : memref<5x1xf32, #tpu.memory_space<vmem>>, vector<5x1xf32>
    %32 = vector.broadcast %31 : vector<5x1xf32> to vector<5x256xf32>
    %33 = arith.addf %30, %32 : vector<5x256xf32>
    %cst_29 = arith.constant 0.000000e+00 : f32
    %34 = vector.broadcast %cst_29 : f32 to vector<5x256xf32>
    %35 = arith.maximumf %33, %34 : vector<5x256xf32>
    %c0_30 = arith.constant 0 : index
    %c0_31 = arith.constant 0 : index
    %36 = vector.load %arg12[%c0_30, %c0_31] : memref<1x5xf32, #tpu.memory_space<vmem>>, vector<1x5xf32>
    %cst_32 = arith.constant dense<0.000000e+00> : vector<1x256xf32>
    %37 = tpu.matmul %36, %35, %cst_32 {dimension_numbers = #tpu.dot_dimension_numbers<[1], [0], [0], [1], [0, 0, 1, 1], [], []>} : vector<1x5xf32>, vector<5x256xf32>, vector<1x256xf32> -> vector<1x256xf32>
    %c0_33 = arith.constant 0 : index
    %c0_34 = arith.constant 0 : index
    %38 = vector.load %arg13[%c0_33, %c0_34] : memref<1x1xf32, #tpu.memory_space<vmem>>, vector<1x1xf32>
    %39 = vector.broadcast %38 : vector<1x1xf32> to vector<1x256xf32>
    %40 = arith.addf %37, %39 : vector<1x256xf32>
    %cst_35 = arith.constant 0.000000e+00 : f32
    %41 = vector.broadcast %cst_35 : f32 to vector<1x256xf32>
    %42 = arith.subf %41, %40 : vector<1x256xf32>
    %43 = math.exp %42 : vector<1x256xf32>
    %cst_36 = arith.constant 1.000000e+00 : f32
    %44 = vector.broadcast %cst_36 : f32 to vector<1x256xf32>
    %45 = arith.addf %44, %43 : vector<1x256xf32>
    %46 = tpu.reciprocal %45 {approx = true} : vector<1x256xf32> -> vector<1x256xf32>
    %c0_37 = arith.constant 0 : index
    %c0_38 = arith.constant 0 : index
    %47 = vector.load %arg14[%c0_37, %c0_38] : memref<1x256xf32, #tpu.memory_space<vmem>>, vector<1x256xf32>
    tpu.vector_store %arg14[%c0_37, %c0_38], %46 {strides = array<i32>} : memref<1x256xf32, #tpu.memory_space<vmem>>, vector<1x256xf32>,
    return
  }
  func.func @transform_0(%arg0: i32) -> (i32, i32) {
    %c0_i32 = arith.constant 0 : i32
    %c0_i32_0 = arith.constant 0 : i32
    return %c0_i32, %arg0 : i32, i32
  }
  func.func @transform_1(%arg0: i32) -> (i32, i32) {
    %c0_i32 = arith.constant 0 : i32
    %c0_i32_0 = arith.constant 0 : i32
    %c0_i32_1 = arith.constant 0 : i32
    return %c0_i32, %c0_i32_0 : i32, i32
  }
  func.func @transform_2(%arg0: i32) -> (i32, i32) {
    %c0_i32 = arith.constant 0 : i32
    %c0_i32_0 = arith.constant 0 : i32
    %c0_i32_1 = arith.constant 0 : i32
    return %c0_i32, %c0_i32_0 : i32, i32
  }
  func.func @transform_3(%arg0: i32) -> (i32, i32) {
    %c0_i32 = arith.constant 0 : i32
    %c0_i32_0 = arith.constant 0 : i32
    %c0_i32_1 = arith.constant 0 : i32
    return %c0_i32, %c0_i32_0 : i32, i32
  }
  func.func @transform_4(%arg0: i32) -> (i32, i32) {
    %c0_i32 = arith.constant 0 : i32
    %c0_i32_0 = arith.constant 0 : i32
    %c0_i32_1 = arith.constant 0 : i32
    return %c0_i32, %c0_i32_0 : i32, i32
  }
  func.func @transform_5(%arg0: i32) -> (i32, i32) {
    %c0_i32 = arith.constant 0 : i32
    %c0_i32_0 = arith.constant 0 : i32
    %c0_i32_1 = arith.constant 0 : i32
    return %c0_i32, %c0_i32_0 : i32, i32
  }
  func.func @transform_6(%arg0: i32) -> (i32, i32) {
    %c0_i32 = arith.constant 0 : i32
    %c0_i32_0 = arith.constant 0 : i32
    %c0_i32_1 = arith.constant 0 : i32
    return %c0_i32, %c0_i32_0 : i32, i32
  }
  func.func @transform_7(%arg0: i32) -> (i32, i32) {
    %c0_i32 = arith.constant 0 : i32
    %c0_i32_0 = arith.constant 0 : i32
    %c0_i32_1 = arith.constant 0 : i32
    return %c0_i32, %c0_i32_0 : i32, i32
  }
  func.func @transform_8(%arg0: i32) -> (i32, i32) {
    %c0_i32 = arith.constant 0 : i32
    %c0_i32_0 = arith.constant 0 : i32
    %c0_i32_1 = arith.constant 0 : i32
    return %c0_i32, %c0_i32_0 : i32, i32
  }
  func.func @transform_9(%arg0: i32) -> (i32, i32) {
    %c0_i32 = arith.constant 0 : i32
    %c0_i32_0 = arith.constant 0 : i32
    %c0_i32_1 = arith.constant 0 : i32
    return %c0_i32, %c0_i32_0 : i32, i32
  }
  func.func @transform_10(%arg0: i32) -> (i32, i32) {
    %c0_i32 = arith.constant 0 : i32
    %c0_i32_0 = arith.constant 0 : i32
    %c0_i32_1 = arith.constant 0 : i32
    return %c0_i32, %c0_i32_0 : i32, i32
  }
  func.func @transform_11(%arg0: i32) -> (i32, i32) {
    %c0_i32 = arith.constant 0 : i32
    %c0_i32_0 = arith.constant 0 : i32
    %c0_i32_1 = arith.constant 0 : i32
    return %c0_i32, %c0_i32_0 : i32, i32
  }
  func.func @transform_12(%arg0: i32) -> (i32, i32) {
    %c0_i32 = arith.constant 0 : i32
    %c0_i32_0 = arith.constant 0 : i32
    %c0_i32_1 = arith.constant 0 : i32
    return %c0_i32, %c0_i32_0 : i32, i32
  }
  func.func @transform_13(%arg0: i32) -> (i32, i32) {
    %c0_i32 = arith.constant 0 : i32
    %c0_i32_0 = arith.constant 0 : i32
    return %c0_i32, %arg0 : i32, i32
  }
}

</mosaic_0001>

<bundles_post_ra>
// kernel: tpu_custom_call.1
= control target key start
LH: loop header
LB: loop body
LE: loop exit
PB: predicated region body
PF: predicated region fallthrough
CT: control target
= control target key end

     0   :  { %s1183_s0 = inlined_call_operand.vmem [shape: f32[12,256], index: 0, kind: input, shape index: {}]   ;;  %s1184_s1 = inlined_call_operand.vmem [shape: f32[50,12], index: 1, kind: input, shape index: {}]   ;;  %s1185_s2 = inlined_call_operand.vmem [shape: f32[50,1], index: 2, kind: input, shape index: {}]   ;;  %s1186_s3 = inlined_call_operand.vmem [shape: f32[30,50], index: 3, kind: input, shape index: {}]   ;;  %s1187_s4 = inlined_call_operand.vmem [shape: f32[30,1], index: 4, kind: input, shape index: {}]   ;;  %s1188_s5 = inlined_call_operand.vmem [shape: f32[15,30], index: 5, kind: input, shape index: {}]   ;;  %s1189_s6 = inlined_call_operand.vmem [shape: f32[15,1], index: 6, kind: input, shape index: {}]   ;;  %s1190_s7 = inlined_call_operand.vmem [shape: f32[10,15], index: 7, kind: input, shape index: {}]   ;;  %s1191_s8 = inlined_call_operand.vmem [shape: f32[10,1], index: 8, kind: input, shape index: {}]   ;;  %s1192_s9 = inlined_call_operand.vmem [shape: f32[5,10], index: 9, kind: input, shape index: {}]   ;;  %s1193_s10 = inlined_call_operand.vmem [shape: f32[5,1], index: 10, kind: input, shape index: {}]   ;;  %s1194_s11 = inlined_call_operand.vmem [shape: f32[1,5], index: 11, kind: input, shape index: {}]   ;;  %s1195_s12 = inlined_call_operand.<no memory space> [shape: f32[1,1], index: 12, kind: input, shape index: {}]   ;;  %s1196_s13 = inlined_call_operand.hbm [shape: f32[1,256], index: 13, kind: output, shape index: {}]  }
   0x1   :  { %v18_v0 = vstv %s1195_s12 }
   0x2   :  { %19 = vst [vmem:[#allocation2] sm:$0x1] %v18_v0 }
   0x3   :  { %v48_v1 = vld [vmem:[%s1183_s0 + $0x8] sm:$0xff]  ;;  %v50_v2 = vld [vmem:[%s1183_s0 + $0x18] sm:$0xf]  ;;  %vm122_vm0 = vcmask 1043456   ;;  %v47_v3 = vld [vmem:[%s1183_s0] sm:$0xff]  ;;  %vm951_vm1 = vmmov 1  }
   0x4   :  { %v872_v4 = vpack.c.bf16 %v50_v2, %v48_v1  ;;  %vm873_vm2 = vmpackc.low %vm122_vm0, %vm951_vm1  ;;  %v49_v5 = vld [vmem:[%s1183_s0 + $0x10] sm:$0xf]  ;;  %v952_v7 = vmov 0.0   ;;  %v953_v8 = vmov 0   ;;  %v51_v9 = vld [vmem:[%s1184_s1] sm:$0xff]  ;;  %vm100_vm3 = vcmask 97280  }
   0x5   :  { %v875_v6 = vpack.c.bf16 %v49_v5, %v47_v3  ;;  %193 = vmatprep.mubr.f32.mxu0 %v952_v7  ;;  %917 = vset.pattern.permute.xlu0 %v953_v8  ;;  %v58_v10 = vld [vmem:[%s1185_s2] sm:$0xff]  ;;  %v60_v11 = vld [vmem:[%s1185_s2 + $0x10] sm:$0xff]  ;;  %v59_v12 = vld [vmem:[%s1185_s2 + $0x8] sm:$0xff] }
   0x6   :  { %874 = vmatprep.subr.msk.bf16.mxu0 %vm873_vm2, %v872_v4  ;;  %918 = vset.pattern.permute.xlu1 %v953_v8  ;;  %v61_v13 = vld [vmem:[%s1185_s2 + $0x18] sm:$0xff]  ;;  %v52_v14 = vld [vmem:[%s1184_s1 + $0x8] sm:$0xff] }
   0x7   :  { %877 = vmatpush1.bf16.msk.msra.mxu0 %vm873_vm2, %v875_v6  ;;  %362 = vmatprep.mubr.f32.mxu1 %v952_v7 }
   0x8   :  { %67 = vperm.xlu0 %917, %v58_v10   ;;  %77 = vperm.xlu1 %918, %v60_v11  }
   0xa   :  { %845 = vmatmul.mubr.msk.f32.vlgmr.msra.gmra.mrb[0].mxu0 %vm100_vm3, %v51_v9 }
   0xb   :  { %199 = vmatprep.mubr.f32.mxu0 %v952_v7 }
   0xc   :  { %72 = vperm.xlu0 %917, %v59_v12   ;;  %82 = vperm.xlu1 %918, %v61_v13  }
   0xd   :  { %20 = vsyncpa [#allocation4], 0  ;;  %v62_v15 = vld [vmem:[%s1185_s2 + $0x20] sm:$0xff]  ;;  %v63_v16 = vld [vmem:[%s1185_s2 + $0x28] sm:$0xff]  ;;  %vm291_vm4 = vcmask 1041408   ;;  %vm278_vm5 = vcmask 408576  }
   0xe   :  { %846 = vmatmul.mubr.msk.f32.gmra.mrb[2].mxu0 %vm100_vm3, %v52_v14  ;;  %v53_v17 = vld [vmem:[%s1184_s1 + $0x10] sm:$0xff]  ;;  %v254_v19 = vld [vmem:[%s1187_s4] sm:$0xff]  ;;  %v54_v20 = vld [vmem:[%s1184_s1 + $0x18] sm:$0xff]  ;;  %vm416_vm6 = vcmask 1045504   ;;  %vm409_vm8 = vcmask 244736   ;;  %vm525_vm9 = vcmask 1046528  }
   0xf   :  { %205 = vmatprep.mubr.f32.mxu0 %v952_v7  ;;  %v64_v18 = vld [vmem:[%s1185_s2 + $0x30] sm:$0x3]  ;;  %v255_v21 = vld [vmem:[%s1187_s4 + $0x8] sm:$0xff]  ;;  %v55_v23 = vld [vmem:[%s1184_s1 + $0x20] sm:$0xff]  ;;  %vm518_vm11 = vcmask 121856   ;;  %vm620_vm13 = vcmask 80896  }
  0x10   :  { %87 = vperm.xlu0 %917, %v62_v15   ;;  %92 = vperm.xlu1 %918, %v63_v16   ;;  %v256_v22 = vld [vmem:[%s1187_s4 + $0x10] sm:$0xff]  ;;  %v257_v24 = vld [vmem:[%s1187_s4 + $0x18] sm:$0x3f]  ;;  %v397_v25 = vld [vmem:[%s1189_s6] sm:$0xff]  ;;  %vm718_vm14 = vcmask 1044480   ;;  %vm714_vm15 = vcmask 39936  }
  0x11   :  { %v56_v26 = vld [vmem:[%s1184_s1 + $0x28] sm:$0xff]  ;;  %v506_v28 = vld [vmem:[%s1191_s8] sm:$0xff]  ;;  %v57_v29 = vld [vmem:[%s1184_s1 + $0x30] sm:$0x3] }
  0x12   :  { %847 = vmatmul.mubr.msk.f32.gmra.mrb[4].mxu0 %vm100_vm3, %v53_v17  ;;  %v398_v27 = vld [vmem:[%s1189_s6 + $0x8] sm:$0x7f]  ;;  %v614_v31 = vld [vmem:[%s1193_s10] sm:$0x1f]  ;;  %vm895_vm7 = vmpackc.low %vm416_vm6, %vm951_vm1 }
  0x13   :  { %211 = vmatprep.mubr.f32.mxu0 %v952_v7  ;;  %v507_v30 = vld [vmem:[%s1191_s8 + $0x8] sm:$0x3]  ;;  %v704_v32 = vld [vmem:[#allocation2] sm:$0x1]  ;;  %vm901_vm10 = vmpackc.low %vm525_vm9, %vm951_vm1 }
  0x14   :  { %97 = vperm.xlu0 %917, %v64_v18   ;;  %260 = vperm.xlu1 %918, %v254_v19   ;;  %vm907_vm12 = vmpackc.low %vm291_vm4, %vm951_vm1 }
  0x16   :  { %848 = vmatmul.mubr.msk.f32.gmra.mrb[6].mxu0 %vm100_vm3, %v54_v20 }
  0x17   :  { %217 = vmatprep.mubr.f32.mxu0 %v952_v7 }
  0x18   :  { %265 = vperm.xlu0 %917, %v255_v21   ;;  %270 = vperm.xlu1 %918, %v256_v22  }
  0x1a   :  { %849 = vmatmul.mubr.msk.f32.gmra.mrb[8].mxu0 %vm100_vm3, %v55_v23 }
  0x1b   :  { %223 = vmatprep.mubr.f32.mxu0 %v952_v7 }
  0x1c   :  { %275 = vperm.xlu0 %917, %v257_v24   ;;  %401 = vperm.xlu1 %918, %v397_v25   ;;  %v250_v25 = vld [vmem:[%s1186_s3] sm:$0xff] }
  0x1e   :  { %850 = vmatmul.mubr.msk.f32.gmra.mrb[10].mxu0 %vm100_vm3, %v56_v26  ;;  %v251_v26 = vld [vmem:[%s1186_s3 + $0x8] sm:$0xff] }
  0x1f   :  { %229 = vmatprep.mubr.f32.mxu0 %v952_v7 }
  0x20   :  { %406 = vperm.xlu0 %917, %v398_v27   ;;  %510 = vperm.xlu1 %918, %v506_v28   ;;  %v252_v27 = vld [vmem:[%s1186_s3 + $0x10] sm:$0xff]  ;;  %v253_v28 = vld [vmem:[%s1186_s3 + $0x18] sm:$0x3f] }
  0x22   :  { %851 = vmatmul.mubr.msk.f32.gmra.mrb[12].mxu0 %vm100_vm3, %v57_v29 }
  0x23   :  { %596 = vmatprep.mubr.f32.mxu0 %v952_v7 }
  0x24   :  { %515 = vperm.xlu0 %917, %v507_v30   ;;  %617 = vperm.xlu1 %918, %v614_v31  }
  0x28   :  { %707 = vperm.xlu0 %917, %v704_v32  }
  0x87   :  { %v68_v33 = vpop.permute.xlu0 %67  ;;  %v78_v42 = vpop.permute.xlu1 %77 }
  0x8b   :  { %v73_v37 = vpop.permute.xlu0 %72  ;;  %v83_v53 = vpop.permute.xlu1 %82 }
  0x8f   :  { %v88_v2 = vpop.permute.xlu0 %87  ;;  %v93_v5 = vpop.permute.xlu1 %92 }
  0x93   :  { %v98_v17 = vpop.permute.xlu0 %97  ;;  %v261_v31 = vpop.permute.xlu1 %260 }
  0xdd   :  { %v195_v34 = vpop.f32.mrb[0].mxu0 }
  0xde   :  { %v197_v35 = vpop.f32.mrb[1].mxu0  ;;  %v196_v36 = vadd.f32 %v195_v34, %v68_v33 }
  0xdf   :  { %v198_v38 = vadd.f32 %v197_v35, %v68_v33  ;;  %v266_v33 = vpop.permute.xlu0 %265 }
  0xe0   :  { %v236_v44 = vmax.f32 %v196_v36, 0.0 }
  0xe1   :  { %v201_v39 = vpop.f32.mrb[2].mxu0  ;;  %v237_v46 = vmax.f32 %v198_v38, 0.0 }
  0xe2   :  { %v202_v40 = vadd.f32 %v201_v39, %v73_v37  ;;  %v203_v41 = vpop.f32.mrb[3].mxu0 }
  0xe3   :  { %v204_v43 = vadd.f32 %v203_v41, %v73_v37 }
  0xe4   :  { %v238_v45 = vmax.f32 %v202_v40, 0.0 }
  0xe5   :  { %v239_v47 = vmax.f32 %v204_v43, 0.0  ;;  %v207_v48 = vpop.f32.mrb[4].mxu0 }
  0xe6   :  { %v209_v49 = vpop.f32.mrb[5].mxu0  ;;  %v880_v50 = vpack.c.bf16 %v238_v45, %v236_v44  ;;  %v208_v52 = vadd.f32 %v207_v48, %v78_v42 }
  0xe7   :  { %v878_v51 = vpack.c.bf16 %v239_v47, %v237_v46  ;;  %v210_v54 = vadd.f32 %v209_v49, %v78_v42  ;;  %v271_v46 = vpop.permute.xlu1 %270  ;;  %v276_v49 = vpop.permute.xlu0 %275 }
  0xe8   :  { %v240_v59 = vmax.f32 %v208_v52, 0.0 }
  0xe9   :  { %v213_v55 = vpop.f32.mrb[6].mxu0  ;;  %879 = vmatprep.subr.bf16.mxu1 %v878_v51  ;;  %v241_v61 = vmax.f32 %v210_v54, 0.0 }
  0xea   :  { %v214_v56 = vadd.f32 %v213_v55, %v83_v53  ;;  %v215_v57 = vpop.f32.mrb[7].mxu0  ;;  %881 = vmatpush1.bf16.msra.mxu1 %v880_v50 }
  0xeb   :  { %v216_v58 = vadd.f32 %v215_v57, %v83_v53 }
  0xec   :  { %v242_v60 = vmax.f32 %v214_v56, 0.0 }
  0xed   :  { %v243_v62 = vmax.f32 %v216_v58, 0.0  ;;  %v219_v63 = vpop.f32.mrb[8].mxu0 }
  0xee   :  { %v884_v0 = vpack.c.bf16 %v242_v60, %v240_v59  ;;  %v221_v1 = vpop.f32.mrb[9].mxu0  ;;  %v220_v4 = vadd.f32 %v219_v63, %v88_v2 }
  0xef   :  { %v882_v3 = vpack.c.bf16 %v243_v62, %v241_v61  ;;  %v222_v6 = vadd.f32 %v221_v1, %v88_v2  ;;  %v395_v61 = vld [vmem:[%s1188_s5] sm:$0xff]  ;;  %v396_v62 = vld [vmem:[%s1188_s5 + $0x8] sm:$0x7f]  ;;  %v402_v1 = vpop.permute.xlu1 %401 }
  0xf0   :  { %v244_v12 = vmax.f32 %v220_v4, 0.0 }
  0xf1   :  { %v225_v8 = vpop.f32.mrb[10].mxu0  ;;  %883 = vmatprep.subr.bf16.mxu1 %v882_v3  ;;  %v245_v14 = vmax.f32 %v222_v6, 0.0  ;;  %v407_v3 = vpop.permute.xlu0 %406 }
  0xf2   :  { %v226_v9 = vadd.f32 %v225_v8, %v93_v5  ;;  %v227_v10 = vpop.f32.mrb[11].mxu0  ;;  %885 = vmatpush1.bf16.msra.mxu1 %v884_v0 }
  0xf3   :  { %v228_v11 = vadd.f32 %v227_v10, %v93_v5 }
  0xf4   :  { %v246_v13 = vmax.f32 %v226_v9, 0.0 }
  0xf5   :  { %v247_v15 = vmax.f32 %v228_v11, 0.0  ;;  %v231_v16 = vpop.f32.mrb[12].mxu0 }
  0xf6   :  { %v888_v18 = vpack.c.bf16 %v246_v13, %v244_v12  ;;  %v233_v19 = vpop.f32.mrb[13].mxu0  ;;  %v232_v22 = vadd.f32 %v231_v16, %v98_v17  ;;  %v504_v16 = vld [vmem:[%s1190_s7] sm:$0xff] }
  0xf7   :  { %v886_v20 = vpack.c.bf16 %v247_v15, %v245_v14  ;;  %v234_v21 = vadd.f32 %v233_v19, %v98_v17  ;;  %v505_v17 = vld [vmem:[%s1190_s7 + $0x8] sm:$0x3] }
  0xf8   :  { %v248_v24 = vmax.f32 %v232_v22, 0.0  ;;  %v516_v22 = vpop.permute.xlu0 %515 }
  0xf9   :  { %v249_v23 = vmax.f32 %v234_v21, 0.0  ;;  %887 = vmatprep.subr.bf16.mxu1 %v886_v20  ;;  %v511_v20 = vpop.permute.xlu1 %510 }
  0xfa   :  { %889 = vmatpush1.bf16.msra.mxu1 %v888_v18 }
  0xfb   :  { %852 = vmatprep.subr.msk.mxu1 %vm291_vm4, %v249_v23 }
  0xfe   :  { %853 = vmatpush1.msk.msra.mxu1 %vm291_vm4, %v248_v24 }
  0xff   :  { %854 = vmatmul.mubr.msk.f32.vlgmr.msra.gmra.mrb[0].mxu1 %vm278_vm5, %v250_v25 }
 0x100   :  { %368 = vmatprep.mubr.f32.mxu1 %v952_v7 }
 0x103   :  { %855 = vmatmul.mubr.msk.f32.gmra.mrb[2].mxu1 %vm278_vm5, %v251_v26 }
 0x104   :  { %374 = vmatprep.mubr.f32.mxu1 %v952_v7 }
 0x107   :  { %856 = vmatmul.mubr.msk.f32.gmra.mrb[4].mxu1 %vm278_vm5, %v252_v27 }
 0x108   :  { %380 = vmatprep.mubr.f32.mxu1 %v952_v7 }
 0x10b   :  { %857 = vmatmul.mubr.msk.f32.gmra.mrb[6].mxu1 %vm278_vm5, %v253_v28 }
 0x10c   :  { %487 = vmatprep.mubr.f32.mxu1 %v952_v7 }
 0x1d2   :  { %v364_v29 = vpop.f32.mrb[0].mxu1 }
 0x1d3   :  { %v366_v30 = vpop.f32.mrb[1].mxu1  ;;  %v365_v32 = vadd.f32 %v364_v29, %v261_v31 }
 0x1d4   :  { %v367_v34 = vadd.f32 %v366_v30, %v261_v31 }
 0x1d5   :  { %v387_v39 = vmax.f32 %v365_v32, 0.0 }
 0x1d6   :  { %v370_v35 = vpop.f32.mrb[2].mxu1  ;;  %v388_v41 = vmax.f32 %v367_v34, 0.0  ;;  %v618_v34 = vpop.permute.xlu1 %617 }
 0x1d7   :  { %v371_v36 = vadd.f32 %v370_v35, %v266_v33  ;;  %v372_v37 = vpop.f32.mrb[3].mxu1 }
 0x1d8   :  { %v373_v38 = vadd.f32 %v372_v37, %v266_v33 }
 0x1d9   :  { %v389_v40 = vmax.f32 %v371_v36, 0.0 }
 0x1da   :  { %v390_v42 = vmax.f32 %v373_v38, 0.0  ;;  %v376_v43 = vpop.f32.mrb[4].mxu1 }
 0x1db   :  { %v892_v44 = vpack.c.bf16 %v389_v40, %v387_v39  ;;  %v378_v45 = vpop.f32.mrb[5].mxu1  ;;  %v377_v48 = vadd.f32 %v376_v43, %v271_v46 }
 0x1dc   :  { %v890_v47 = vpack.c.bf16 %v390_v42, %v388_v41  ;;  %v379_v50 = vadd.f32 %v378_v45, %v271_v46  ;;  %v703_v41 = vld [vmem:[%s1194_s11] sm:$0x1]  ;;  %v710_v42 = vlaneseq  ;;  %v708_v45 = vpop.permute.xlu0 %707 }
 0x1dd   :  { %v391_v55 = vmax.f32 %v377_v48, 0.0 }
 0x1de   :  { %v382_v51 = vpop.f32.mrb[6].mxu1  ;;  %891 = vmatprep.subr.bf16.mxu1 %v890_v47  ;;  %v392_v57 = vmax.f32 %v379_v50, 0.0  ;;  %v711_v43 = vshrl.u32 %v710_v42, 7  ;;  %vm826_vm0 = vcmp.lt.s32.totalorder %v710_v42, 256 }
 0x1df   :  { %v383_v52 = vadd.f32 %v382_v51, %v276_v49  ;;  %v384_v53 = vpop.f32.mrb[7].mxu1  ;;  %893 = vmatpush1.bf16.msra.mxu1 %v892_v44 }
 0x1e0   :  { %v385_v54 = vadd.f32 %v384_v53, %v276_v49  ;;  %v712_v44 = vsub.s32 0, %v711_v43 }
 0x1e1   :  { %v393_v56 = vmax.f32 %v383_v52, 0.0 }
 0x1e2   :  { %v394_v58 = vmax.f32 %v385_v54, 0.0  ;;  %v713_v46 = vrot.slane %v708_v45, %v712_v44 }
 0x1e3   :  { %v897_v59 = vpack.c.bf16 %v393_v56, %v391_v55 }
 0x1e4   :  { %v894_v60 = vpack.c.bf16 %v394_v58, %v392_v57 }
 0x1e6   :  { %896 = vmatprep.subr.msk.bf16.mxu1 %vm895_vm7, %v894_v60 }
 0x1e7   :  { %899 = vmatpush1.bf16.msk.msra.mxu1 %vm895_vm7, %v897_v59  ;;  %v954_v59 = vmov 1966171168  }
 0x1e8   :  { %v810_v60 = vunpack.c.l.s4 %v954_v59 }
 0x1ea   :  { %860 = vmatmul.mubr.msk.f32.vlgmr.msra.gmra.mrb[8].mxu1 %vm409_vm8, %v395_v61  ;;  %v811_v61 = vunpack.c.0.s8 %v810_v60 }
 0x1eb   :  { %493 = vmatprep.mubr.f32.mxu1 %v952_v7 }
 0x1ee   :  { %861 = vmatmul.mubr.msk.f32.gmra.mrb[10].mxu1 %vm409_vm8, %v396_v62 }
 0x1ef   :  { %694 = vmatprep.mubr.f32.mxu1 %v952_v7 }
 0x2bd   :  { %v489_v63 = vpop.f32.mrb[8].mxu1 }
 0x2be   :  { %v491_v0 = vpop.f32.mrb[9].mxu1  ;;  %v490_v2 = vadd.f32 %v489_v63, %v402_v1  ;;  %v814_v63 = vsub.s32 %v811_v61, %v711_v43 }
 0x2bf   :  { %v492_v4 = vadd.f32 %v491_v0, %v402_v1 }
 0x2c0   :  { %v500_v10 = vmax.f32 %v490_v2, 0.0 }
 0x2c1   :  { %v495_v5 = vpop.f32.mrb[10].mxu1  ;;  %v501_v12 = vmax.f32 %v492_v4, 0.0 }
 0x2c2   :  { %v496_v6 = vadd.f32 %v495_v5, %v407_v3  ;;  %v497_v8 = vpop.f32.mrb[11].mxu1 }
 0x2c3   :  { %v498_v9 = vadd.f32 %v497_v8, %v407_v3 }
 0x2c4   :  { %v502_v11 = vmax.f32 %v496_v6, 0.0 }
 0x2c5   :  { %v503_v13 = vmax.f32 %v498_v9, 0.0 }
 0x2c6   :  { %v903_v14 = vpack.c.bf16 %v502_v11, %v500_v10 }
 0x2c7   :  { %v900_v15 = vpack.c.bf16 %v503_v13, %v501_v12 }
 0x2c9   :  { %902 = vmatprep.subr.msk.bf16.mxu0 %vm901_vm10, %v900_v15 }
 0x2ca   :  { %905 = vmatpush1.bf16.msk.msra.mxu0 %vm901_vm10, %v903_v14 }
 0x2cd   :  { %864 = vmatmul.mubr.msk.f32.vlgmr.msra.gmra.mrb[14].mxu0 %vm518_vm11, %v504_v16 }
 0x2ce   :  { %602 = vmatprep.mubr.f32.mxu0 %v952_v7 }
 0x2d1   :  { %865 = vmatmul.mubr.msk.f32.gmra.mrb[16].mxu0 %vm518_vm11, %v505_v17 }
 0x2d2   :  { %789 = vmatprep.mubr.f32.mxu0 %v952_v7  ;;  %v613_v7 = vld [vmem:[%s1192_s9] sm:$0x1f]  ;;  %s955_s9 = smov [#allocation3]  }
 0x2d3   :  { %s835_s11 = sshll.u32 %s955_s9, 4  ;;  %s836_s11 = int_to_ptr.vmem [resolvable:$true] %s835_s11 }
 0x2d4   :  { %s927_s12 = scalar_lea.vmem %s836_s11, 32  ;;  %p932_p1 = scmp.lt.s32.totalorder %s836_s11, %s836_s11 }
 0x2d5   :  { %p928_p0 = scmp.ne.s32.totalorder %s836_s11, %s927_s12  ;;  %p933_p2 = scmp.lt.s32.totalorder %s927_s12, %s927_s12 }
 0x2d7   :  { %p934_p3 = por %p933_p2, %p932_p1 }
 0x2d9   :  { %p935_p4 = pnand %p934_p3, %p928_p0 }
 0x3a0   :  { %v598_v18 = vpop.f32.mrb[14].mxu0 }
 0x3a1   :  { %v600_v19 = vpop.f32.mrb[15].mxu0  ;;  %v599_v21 = vadd.f32 %v598_v18, %v511_v20 }
 0x3a2   :  { %v601_v23 = vadd.f32 %v600_v19, %v511_v20 }
 0x3a3   :  { %v609_v28 = vmax.f32 %v599_v21, 0.0 }
 0x3a4   :  { %v604_v24 = vpop.f32.mrb[16].mxu0  ;;  %v610_v30 = vmax.f32 %v601_v23, 0.0 }
 0x3a5   :  { %v605_v25 = vadd.f32 %v604_v24, %v516_v22  ;;  %v606_v26 = vpop.f32.mrb[17].mxu0 }
 0x3a6   :  { %v607_v27 = vadd.f32 %v606_v26, %v516_v22 }
 0x3a7   :  { %v611_v29 = vmax.f32 %v605_v25, 0.0 }
 0x3a8   :  { %v612_v31 = vmax.f32 %v607_v27, 0.0 }
 0x3a9   :  { %v909_v32 = vpack.c.bf16 %v611_v29, %v609_v28 }
 0x3aa   :  { %v906_v33 = vpack.c.bf16 %v612_v31, %v610_v30 }
 0x3ac   :  { %908 = vmatprep.subr.msk.bf16.mxu1 %vm907_vm12, %v906_v33 }
 0x3ad   :  { %911 = vmatpush1.bf16.msk.msra.mxu1 %vm907_vm12, %v909_v32 }
 0x3b0   :  { %868 = vmatmul.mubr.msk.f32.vlgmr.msra.gmra.mrb[12].mxu1 %vm620_vm13, %v613_v7 }
 0x483   :  { %v696_v35 = vpop.f32.mrb[12].mxu1 }
 0x484   :  { %v697_v36 = vadd.f32 %v696_v35, %v618_v34  ;;  %v698_v37 = vpop.f32.mrb[13].mxu1 }
 0x485   :  { %v699_v38 = vadd.f32 %v698_v37, %v618_v34 }
 0x486   :  { %v701_v40 = vmax.f32 %v697_v36, 0.0 }
 0x487   :  { %v702_v39 = vmax.f32 %v699_v38, 0.0 }
 0x489   :  { %869 = vmatprep.subr.msk.mxu0 %vm718_vm14, %v702_v39 }
 0x48a   :  { %870 = vmatpush1.msk.msra.mxu0 %vm718_vm14, %v701_v40 }
 0x48b   :  { %871 = vmatmul.mubr.msk.f32.vlgmr.msra.gmra.mrb[18].mxu0 %vm714_vm15, %v703_v41 }
 0x55e   :  { %v791_v47 = vpop.f32.mrb[18].mxu0 }
 0x55f   :  { %v792_v48 = vadd.f32 %v791_v47, %v713_v46  ;;  %v793_v49 = vpop.f32.mrb[19].mxu0 }
 0x560   :  { %v794_v50 = vadd.f32 %v793_v49, %v713_v46 }
 0x561   :  { %v796_v51 = vsub.f32 0.0, %v792_v48 }
 0x562   :  { %v797_v52 = vsub.f32 0.0, %v794_v50 }
 0x563   :  { %v798_v53 = vmul.f32 1.442695, %v796_v51 }
 0x564   :  { %v800_v54 = vmul.f32 1.442695, %v797_v52 }
 0x565   :  { %919 = vpow2.f32 %v798_v53 }
 0x566   :  { %921 = vpow2.f32 %v800_v54 }
 0x56f   :  { %v920_v55 = vpop.eup %919 }
 0x570   :  { %v922_v56 = vpop.eup %921  ;;  %v802_v57 = vadd.f32 1.0, %v920_v55 }
 0x571   :  { %v803_v58 = vadd.f32 1.0, %v922_v56 }
 0x572   :  { %923 = vrcp.f32 %v802_v57 }
 0x573   :  { %925 = vrcp.f32 %v803_v58 }
 0x57c   :  { %v924_v62 = vpop.eup %923 }
 0x57d   :  { %v926_v0 = vpop.eup %925 }
 0x57e   :  { %v808_v1 = vcombine.low %v924_v62, %v926_v0 }
 0x580   :  { %v815_v2 = vrot.slane %v808_v1, %v814_v63 }
 0x582   :  { %v822_v3 = vrot.slane %v815_v2, %v814_v63 }
 0x584   :  { %828 = vst.msk [vmem:[#allocation3] sm:$0x3] %vm826_vm0, %v822_v3 }
 0x585   :  { %938 = shalt.err (!%p935_p4)
}
 0x586   :  { %s939_s18 = scalar_lea.hbm %s1196_s13, 32 }
 0x587   :  { %p940_p5 = scmp.ne.s32.totalorder %s1196_s13, %s939_s18  ;;  %p943_p6 = scmp.lt.u32.totalorder %s939_s18, %s1196_s13 }
 0x589   :  { %p945_p7 = pnand %p943_p6, %p940_p5 }
 0x58b   :  { %948 = shalt.err (!%p945_p7)
}
 0x58c   :  { %838 = dma.vmem_to_hbm [thread:$0]  %s836_s11, 32, %s1196_s13, [#allocation4]  }
 0x58d   :  { %949 = dma.done.wait [#allocation4], 32  }
 0x58e   :  { %950 = vsyncadd [#allocation4], 4294967264 }
 0x58f   :  { %842 = vsyncpa [#allocation4], 1 }

</bundles_post_ra>
